<compile_context>
chip_gen: v7x
topology: tpu7x:2x2x1
jax: 0.10.0
libtpu: 0.0.40
codegen_flags: <defaults>
</compile_context>

<pallas_src>
import functools
import math

import jax
import jax.numpy as jnp
from jax.experimental import pallas as pl
from jax.experimental.pallas import tpu as pltpu
from jax.scipy.special import logsumexp as _logsumexp

_NEG_BIG = -1e30   # acts as -inf: exp() underflows to exactly 0 in f32


# --------------------------------------------------------------------------
# Kernel
# --------------------------------------------------------------------------
def _smcce_kernel(y_ref, t_ref, o_ref, *, mask_zero: bool, epsilon: float):
    y = y_ref[...].astype(jnp.float32)            # [TB, C] logits (one cast)
    t = t_ref[...]                                # [TB, P] int32 label ids
    tb, num_classes = y.shape
    num_pos = t.shape[1]

    col = jax.lax.broadcasted_iota(jnp.int32, (tb, num_classes), 1)

    if mask_zero:
        # class 0 is reserved padding: its logit is -inf for all/neg terms.
        y_all = jnp.where(col == 0, _NEG_BIG, y)
    else:
        y_all = y

    # ---- per-class label counts (replaces torch.gather) --------------------
    # cnt[b, c] = number of p with t[b, p] == c.  Counts (not a boolean union)
    # preserve duplicate-label semantics exactly.  Fully unrolled static loop
    # over the small P axis (VALU compare/add only, no 3-D temporaries).
    cnt = jnp.zeros((tb, num_classes), jnp.float32)
    for p in range(num_pos):
        tp = t[:, p:p + 1]                                        # [TB, 1]
        cnt = cnt + (col == tp).astype(jnp.float32)
    if mask_zero:
        cnt = jnp.where(col == 0, 0.0, cnt)       # drop padding labels (id 0)

    # labels hitting the implicit appended zero logit (id == num_classes)
    n_zero = jnp.sum(jnp.where(t == num_classes, 1.0, 0.0),
                     axis=-1, keepdims=True)                      # [TB, 1]

    has_cnt = cnt > 0.0

    # ---- all_loss = logsumexp(concat([y_all, 0]), -1) ----------------------
    m3 = jnp.maximum(jnp.max(y_all, axis=-1, keepdims=True), 0.0)
    e_all = jnp.exp(y_all - m3)                                   # [TB, C]
    exp_neg_m3 = jnp.exp(-m3)
    den = jnp.sum(e_all, axis=-1, keepdims=True) + exp_neg_m3     # [TB, 1]
    all_loss = m3 + jnp.log(den)

    # ---- aux = 1 - exp(logsumexp(y_pos_2) - all_loss) as a direct ratio ----
    # (shared exp pass e_all and shared max m3; no extra exp/log round-trip)
    num = jnp.sum(cnt * e_all, axis=-1, keepdims=True) + n_zero * exp_neg_m3
    aux = jnp.clip(1.0 - num / den, epsilon, 1.0)

    # ---- pos_loss = logsumexp(concat([-y_pos, 0]), -1) ---------------------
    # own masked max m1 (safe for arbitrary logit spread)
    m1 = jnp.maximum(
        jnp.max(jnp.where(has_cnt, -y_all, _NEG_BIG), axis=-1, keepdims=True),
        0.0)
    e_neg = jnp.exp(jnp.where(has_cnt, -y_all - m1, _NEG_BIG))    # [TB, C]
    pos_sum = (jnp.sum(cnt * e_neg, axis=-1, keepdims=True)
               + (n_zero + 1.0) * jnp.exp(-m1))
    pos_loss = m1 + jnp.log(pos_sum)

    o_ref[...] = (pos_loss + all_loss + jnp.log(aux)).astype(o_ref.dtype)


# --------------------------------------------------------------------------
# Tiling / VMEM budgeting
# --------------------------------------------------------------------------
def _vmem_capacity_bytes():
    try:
        info = pltpu.get_tpu_info()
        cap = getattr(info, "vmem_capacity_bytes", None)
        if cap:
            return int(cap)
    except Exception:
        pass
    return 64 * 1024 * 1024     # conservative: v7x physical per-core VMEM


def _choose_tiling(batch, num_classes, num_pos, itemsize):
    """Pick batch tile rows + a matching scoped-VMEM limit for this kernel."""
    vmem_cap = _vmem_capacity_bytes()
    budget = min(vmem_cap // 4, 32 * 1024 * 1024)
    # live per batch row: ~8 C-wide f32 temporaries (y, y_all, iota, cnt,
    # per-p compare, e_all, e_neg, weighted products) + double-buffered
    # input/output tiles in their native dtypes.
    per_row = (8 * num_classes * 4
               + 2 * (num_classes * itemsize + num_pos * 4 + 4) + 128)
    tb = budget // max(per_row, 1)
    tb = max(8, min(2048, (tb // 8) * 8))
    if batch > 8:
        # guarantee >= 2 grid steps so the "parallel" axis feeds both v7x TCs
        half = -(-batch // 2)
        tb = min(tb, max(8, -(-half // 8) * 8))
    tb = min(tb, max(8, -(-batch // 8) * 8))      # don't exceed padded batch
    vmem_limit = int(min(vmem_cap * 3 // 4,
                         max(2 * tb * per_row, 32 * 1024 * 1024)))
    return tb, vmem_limit


# --------------------------------------------------------------------------
# Wrapper
# --------------------------------------------------------------------------
def sparse_multilabel_categorical_crossentropy(y_pred, y_true, *,
                                               mask_zero=False, epsilon=1e-7):
    """Per-row sparse multilabel categorical crossentropy.

    y_pred: [..., num_classes] real-valued logits (native dtype kept).
    y_true: [..., num_positive] integer label ids (id == num_classes hits the
            implicit appended zero logit; id == 0 is padding when mask_zero).
    Returns loss of shape y_pred.shape[:-1], float32.
    """
    y_pred = jnp.asarray(y_pred)
    y_true = jnp.asarray(y_true, jnp.int32)
    lead = y_pred.shape[:-1]
    num_classes = y_pred.shape[-1]
    num_pos = y_true.shape[-1]
    assert tuple(y_true.shape[:-1]) == tuple(lead)

    batch = math.prod(lead) if lead else 1
    yp = y_pred.reshape(batch, num_classes)
    yt = y_true.reshape(batch, num_pos)

    tb, vmem_limit = _choose_tiling(batch, num_classes, num_pos,
                                    yp.dtype.itemsize)
    batch_pad = -(-batch // tb) * tb
    if batch_pad != batch:
        yp = jnp.pad(yp, ((0, batch_pad - batch), (0, 0)))
        yt = jnp.pad(yt, ((0, batch_pad - batch), (0, 0)))

    grid = (batch_pad // tb,)
    kernel = functools.partial(_smcce_kernel, mask_zero=bool(mask_zero),
                               epsilon=float(epsilon))

    cost = pl.CostEstimate(
        flops=int(batch_pad * (num_classes * (3 * num_pos + 12)
                               + 8 * num_pos + 24)),
        transcendentals=int(batch_pad * (2 * num_classes + 8)),
        bytes_accessed=int(batch_pad * (num_classes * yp.dtype.itemsize
                                        + num_pos * 4 + 4)),
    )

    out = pl.pallas_call(
        kernel,
        out_shape=jax.ShapeDtypeStruct((batch_pad, 1), jnp.float32),
        grid=grid,
        in_specs=[
            pl.BlockSpec((tb, num_classes), lambda i: (i, 0)),  # logits
            pl.BlockSpec((tb, num_pos), lambda i: (i, 0)),      # label ids
        ],
        out_specs=pl.BlockSpec((tb, 1), lambda i: (i, 0)),
        compiler_params=pltpu.CompilerParams(
            dimension_semantics=("parallel",),
            vmem_limit_bytes=vmem_limit),
        cost_estimate=cost,
    )(yp, yt)

    loss = out[:batch, 0]
    return loss.reshape(lead)


# --------------------------------------------------------------------------
# Pure-JAX reference (direct transcription of the PyTorch module)
# --------------------------------------------------------------------------
def _reference(y_pred, y_true, mask_zero=False, epsilon=1e-7):
    y_pred = jnp.asarray(y_pred, jnp.float32)
    zeros = jnp.zeros_like(y_pred[..., :1])
    y_pred = jnp.concatenate([y_pred, zeros], axis=-1)
    if mask_zero:
        infs = zeros + jnp.inf
        y_pred = jnp.concatenate([infs, y_pred[..., 1:]], axis=-1)
    y_pos_2 = jnp.take_along_axis(y_pred, y_true, axis=-1)
    y_pos_1 = jnp.concatenate([y_pos_2, zeros], axis=-1)
    if mask_zero:
        y_pred = jnp.concatenate([-infs, y_pred[..., 1:]], axis=-1)
        y_pos_2 = jnp.take_along_axis(y_pred, y_true, axis=-1)
    pos_loss = _logsumexp(-y_pos_1, axis=-1)
    all_loss = _logsumexp(y_pred, axis=-1)
    aux_loss = _logsumexp(y_pos_2, axis=-1) - all_loss
    aux_loss = jnp.clip(1.0 - jnp.exp(aux_loss), epsilon, 1.0)
    neg_loss = all_loss + jnp.log(aux_loss)
    return pos_loss + neg_loss


# --------------------------------------------------------------------------
# Demo / self-test
# --------------------------------------------------------------------------
if __name__ == "__main__":
    key = jax.random.PRNGKey(0)
    k1, k2, k3, k4 = jax.random.split(key, 4)

    BATCH, SEQ, NUM_CLASSES, NUM_POS = 2, 8, 32, 4

    y_pred = jax.random.normal(k1, (BATCH, SEQ, NUM_CLASSES), jnp.float32) * 2.0
    # labels in [0, NUM_CLASSES]; index NUM_CLASSES hits the appended zero logit
    y_true = jax.random.randint(k2, (BATCH, SEQ, NUM_POS), 0,
                                NUM_CLASSES + 1).astype(jnp.int32)

    # ---- default path (mask_zero=False) ----
    loss = sparse_multilabel_categorical_crossentropy(y_pred, y_true)
    loss = jax.block_until_ready(loss)
    ref = _reference(y_pred, y_true, mask_zero=False)
    assert loss.shape == (BATCH, SEQ)
    assert bool(jnp.all(jnp.isfinite(loss)))
    assert bool(jnp.allclose(loss, ref, atol=2e-4, rtol=2e-4)), (loss, ref)

    # ---- mask_zero=True path (label id 0 is padding) ----
    labels = jax.random.randint(k3, (BATCH, SEQ, NUM_POS), 1,
                                NUM_CLASSES + 1).astype(jnp.int32)
    pad = jax.random.bernoulli(k4, 0.3, (BATCH, SEQ, NUM_POS))
    y_true_mz = jnp.where(pad, 0, labels).astype(jnp.int32)

    loss_mz = sparse_multilabel_categorical_crossentropy(
        y_pred, y_true_mz, mask_zero=True)
    loss_mz = jax.block_until_ready(loss_mz)
    ref_mz = _reference(y_pred, y_true_mz, mask_zero=True)
    assert bool(jnp.all(jnp.isfinite(loss_mz)))
    assert bool(jnp.allclose(loss_mz, ref_mz, atol=2e-4, rtol=2e-4)), (loss_mz, ref_mz)

    print("KERNEL_OK")
</pallas_src>

<mosaic_0001>
module attributes {stable_mosaic.version = 11 : i64} {
  func.func @_smcce_kernel(%arg0: i32, %arg1: memref<8x32xf32, #tpu.memory_space<vmem>>, %arg2: memref<8x4xi32, #tpu.memory_space<vmem>>, %arg3: memref<8x1xf32, #tpu.memory_space<vmem>>) attributes {dimension_semantics = [#tpu.dimension_semantics<parallel>], iteration_bounds = array<i64: 2>, scalar_prefetch = 0 : i64, scratch_operands = 0 : i64, tpu.core_type = #tpu.core_type<tc>, window_params = [{transform_indices = @transform_0, window_bounds = array<i64: 8, 32>}, {transform_indices = @transform_1, window_bounds = array<i64: 8, 4>}, {transform_indices = @transform_2, window_bounds = array<i64: 8, 1>}]} {
    %c0 = arith.constant 0 : index
    %c0_0 = arith.constant 0 : index
    %0 = vector.load %arg1[%c0, %c0_0] : memref<8x32xf32, #tpu.memory_space<vmem>>, vector<8x32xf32>
    %c0_1 = arith.constant 0 : index
    %c0_2 = arith.constant 0 : index
    %1 = vector.load %arg2[%c0_1, %c0_2] : memref<8x4xi32, #tpu.memory_space<vmem>>, vector<8x4xi32>
    %2 = tpu.iota {dimensions = array<i32: 1>} : vector<8x32xi32>
    %cst = arith.constant 0.000000e+00 : f32
    %3 = vector.broadcast %cst : f32 to vector<8x32xf32>
    %4 = vector.extract_strided_slice %1 {offsets = [0, 0], sizes = [8, 1], strides = [1, 1]} : vector<8x4xi32> to vector<8x1xi32>
    %5 = vector.broadcast %4 : vector<8x1xi32> to vector<8x32xi32>
    %6 = arith.cmpi eq, %2, %5 : vector<8x32xi32>
    %7 = arith.extui %6 : vector<8x32xi1> to vector<8x32xi32>
    %8 = arith.sitofp %7 : vector<8x32xi32> to vector<8x32xf32>
    %9 = arith.addf %3, %8 : vector<8x32xf32>
    %10 = vector.extract_strided_slice %1 {offsets = [0, 1], sizes = [8, 1], strides = [1, 1]} : vector<8x4xi32> to vector<8x1xi32>
    %11 = vector.broadcast %10 : vector<8x1xi32> to vector<8x32xi32>
    %12 = arith.cmpi eq, %2, %11 : vector<8x32xi32>
    %13 = arith.extui %12 : vector<8x32xi1> to vector<8x32xi32>
    %14 = arith.sitofp %13 : vector<8x32xi32> to vector<8x32xf32>
    %15 = arith.addf %9, %14 : vector<8x32xf32>
    %16 = vector.extract_strided_slice %1 {offsets = [0, 2], sizes = [8, 1], strides = [1, 1]} : vector<8x4xi32> to vector<8x1xi32>
    %17 = vector.broadcast %16 : vector<8x1xi32> to vector<8x32xi32>
    %18 = arith.cmpi eq, %2, %17 : vector<8x32xi32>
    %19 = arith.extui %18 : vector<8x32xi1> to vector<8x32xi32>
    %20 = arith.sitofp %19 : vector<8x32xi32> to vector<8x32xf32>
    %21 = arith.addf %15, %20 : vector<8x32xf32>
    %22 = vector.extract_strided_slice %1 {offsets = [0, 3], sizes = [8, 1], strides = [1, 1]} : vector<8x4xi32> to vector<8x1xi32>
    %23 = vector.broadcast %22 : vector<8x1xi32> to vector<8x32xi32>
    %24 = arith.cmpi eq, %2, %23 : vector<8x32xi32>
    %25 = arith.extui %24 : vector<8x32xi1> to vector<8x32xi32>
    %26 = arith.sitofp %25 : vector<8x32xi32> to vector<8x32xf32>
    %27 = arith.addf %21, %26 : vector<8x32xf32>
    %c32_i32 = arith.constant 32 : i32
    %28 = vector.broadcast %c32_i32 : i32 to vector<8x4xi32>
    %29 = arith.cmpi eq, %1, %28 : vector<8x4xi32>
    %cst_3 = arith.constant 1.000000e+00 : f32
    %cst_4 = arith.constant 0.000000e+00 : f32
    %30 = vector.broadcast %cst_3 : f32 to vector<8x4xf32>
    %31 = vector.broadcast %cst_4 : f32 to vector<8x4xf32>
    %32 = arith.select %29, %30, %31 : vector<8x4xi1>, vector<8x4xf32>
    %cst_5 = arith.constant dense<0.000000e+00> : vector<8xf32>
    %33 = vector.multi_reduction <add>, %32, %cst_5 [1] : vector<8x4xf32> to vector<8xf32>
    %34 = vector.shape_cast %33 : vector<8xf32> to vector<8x1xf32>
    %cst_6 = arith.constant 0.000000e+00 : f32
    %35 = vector.broadcast %cst_6 : f32 to vector<8x32xf32>
    %36 = arith.cmpf ogt, %27, %35 : vector<8x32xf32>
    %cst_7 = arith.constant dense<0xFF800000> : vector<8xf32>
    %37 = vector.multi_reduction <maximumf>, %0, %cst_7 [1] : vector<8x32xf32> to vector<8xf32>
    %38 = vector.shape_cast %37 : vector<8xf32> to vector<8x1xf32>
    %cst_8 = arith.constant 0.000000e+00 : f32
    %39 = vector.broadcast %cst_8 : f32 to vector<8x1xf32>
    %40 = arith.maximumf %38, %39 : vector<8x1xf32>
    %41 = vector.broadcast %40 : vector<8x1xf32> to vector<8x32xf32>
    %42 = arith.subf %0, %41 : vector<8x32xf32>
    %43 = math.exp %42 : vector<8x32xf32>
    %cst_9 = arith.constant 0.000000e+00 : f32
    %44 = vector.broadcast %cst_9 : f32 to vector<8x1xf32>
    %45 = arith.subf %44, %40 : vector<8x1xf32>
    %46 = math.exp %45 : vector<8x1xf32>
    %cst_10 = arith.constant dense<0.000000e+00> : vector<8xf32>
    %47 = vector.multi_reduction <add>, %43, %cst_10 [1] : vector<8x32xf32> to vector<8xf32>
    %48 = vector.shape_cast %47 : vector<8xf32> to vector<8x1xf32>
    %49 = arith.addf %48, %46 : vector<8x1xf32>
    %50 = math.log %49 : vector<8x1xf32>
    %51 = arith.addf %40, %50 : vector<8x1xf32>
    %52 = arith.mulf %27, %43 : vector<8x32xf32>
    %cst_11 = arith.constant dense<0.000000e+00> : vector<8xf32>
    %53 = vector.multi_reduction <add>, %52, %cst_11 [1] : vector<8x32xf32> to vector<8xf32>
    %54 = vector.shape_cast %53 : vector<8xf32> to vector<8x1xf32>
    %55 = arith.mulf %34, %46 : vector<8x1xf32>
    %56 = arith.addf %54, %55 : vector<8x1xf32>
    %57 = arith.divf %56, %49 : vector<8x1xf32>
    %cst_12 = arith.constant 1.000000e+00 : f32
    %58 = vector.broadcast %cst_12 : f32 to vector<8x1xf32>
    %59 = arith.subf %58, %57 : vector<8x1xf32>
    %cst_13 = arith.constant 1.000000e-07 : f32
    %cst_14 = arith.constant 1.000000e+00 : f32
    %60 = vector.broadcast %cst_13 : f32 to vector<8x1xf32>
    %61 = arith.maximumf %60, %59 : vector<8x1xf32>
    %62 = vector.broadcast %cst_14 : f32 to vector<8x1xf32>
    %63 = arith.minimumf %62, %61 : vector<8x1xf32>
    %cst_15 = arith.constant 0.000000e+00 : f32
    %64 = vector.broadcast %cst_15 : f32 to vector<8x32xf32>
    %65 = arith.subf %64, %0 : vector<8x32xf32>
    %cst_16 = arith.constant -1.000000e+30 : f32
    %66 = vector.broadcast %cst_16 : f32 to vector<8x32xf32>
    %67 = arith.select %36, %65, %66 : vector<8x32xi1>, vector<8x32xf32>
    %cst_17 = arith.constant dense<0xFF800000> : vector<8xf32>
    %68 = vector.multi_reduction <maximumf>, %67, %cst_17 [1] : vector<8x32xf32> to vector<8xf32>
    %69 = vector.shape_cast %68 : vector<8xf32> to vector<8x1xf32>
    %cst_18 = arith.constant 0.000000e+00 : f32
    %70 = vector.broadcast %cst_18 : f32 to vector<8x1xf32>
    %71 = arith.maximumf %69, %70 : vector<8x1xf32>
    %cst_19 = arith.constant 0.000000e+00 : f32
    %72 = vector.broadcast %cst_19 : f32 to vector<8x32xf32>
    %73 = arith.subf %72, %0 : vector<8x32xf32>
    %74 = vector.broadcast %71 : vector<8x1xf32> to vector<8x32xf32>
    %75 = arith.subf %73, %74 : vector<8x32xf32>
    %cst_20 = arith.constant -1.000000e+30 : f32
    %76 = vector.broadcast %cst_20 : f32 to vector<8x32xf32>
    %77 = arith.select %36, %75, %76 : vector<8x32xi1>, vector<8x32xf32>
    %78 = math.exp %77 : vector<8x32xf32>
    %79 = arith.mulf %27, %78 : vector<8x32xf32>
    %cst_21 = arith.constant dense<0.000000e+00> : vector<8xf32>
    %80 = vector.multi_reduction <add>, %79, %cst_21 [1] : vector<8x32xf32> to vector<8xf32>
    %81 = vector.shape_cast %80 : vector<8xf32> to vector<8x1xf32>
    %cst_22 = arith.constant 1.000000e+00 : f32
    %82 = vector.broadcast %cst_22 : f32 to vector<8x1xf32>
    %83 = arith.addf %34, %82 : vector<8x1xf32>
    %cst_23 = arith.constant 0.000000e+00 : f32
    %84 = vector.broadcast %cst_23 : f32 to vector<8x1xf32>
    %85 = arith.subf %84, %71 : vector<8x1xf32>
    %86 = math.exp %85 : vector<8x1xf32>
    %87 = arith.mulf %83, %86 : vector<8x1xf32>
    %88 = arith.addf %81, %87 : vector<8x1xf32>
    %89 = math.log %88 : vector<8x1xf32>
    %90 = arith.addf %71, %89 : vector<8x1xf32>
    %91 = arith.addf %90, %51 : vector<8x1xf32>
    %92 = math.log %63 : vector<8x1xf32>
    %93 = arith.addf %91, %92 : vector<8x1xf32>
    %c0_24 = arith.constant 0 : index
    %c0_25 = arith.constant 0 : index
    %94 = vector.load %arg3[%c0_24, %c0_25] : memref<8x1xf32, #tpu.memory_space<vmem>>, vector<8x1xf32>
    tpu.vector_store %arg3[%c0_24, %c0_25], %93 {strides = array<i32>} : memref<8x1xf32, #tpu.memory_space<vmem>>, vector<8x1xf32>,
    return
  }
  func.func @transform_0(%arg0: i32) -> (i32, i32) {
    %c0_i32 = arith.constant 0 : i32
    %c0_i32_0 = arith.constant 0 : i32
    return %arg0, %c0_i32 : i32, i32
  }
  func.func @transform_1(%arg0: i32) -> (i32, i32) {
    %c0_i32 = arith.constant 0 : i32
    %c0_i32_0 = arith.constant 0 : i32
    return %arg0, %c0_i32 : i32, i32
  }
  func.func @transform_2(%arg0: i32) -> (i32, i32) {
    %c0_i32 = arith.constant 0 : i32
    %c0_i32_0 = arith.constant 0 : i32
    return %arg0, %c0_i32 : i32, i32
  }
}

</mosaic_0001>

<bundles_post_ra>
// kernel: tpu_custom_call.1
= control target key start
LH: loop header
LB: loop body
LE: loop exit
PB: predicated region body
PF: predicated region fallthrough
CT: control target
= control target key end

     0   :  { %s394_s9 = smov 0   ;;  %s426_s0 = inlined_call_operand.vmem [shape: f32[16,32], index: 0, kind: input, shape index: {}]   ;;  %s427_s1 = inlined_call_operand.vmem [shape: s32[16,4], index: 1, kind: input, shape index: {}]   ;;  %s428_s2 = inlined_call_operand.vmem [shape: f32[16,1], index: 2, kind: output, shape index: {}]  }
   0x1 LB: > { %s318_s10 = sadd.s32 4294967295, %s372_s9   ;;  %p322_p0 = scmp.ge.s32.totalorder %s372_s9, 1  ;;  %s372_s9 = sphi %s394_s9, %s12_s9  }
   0x2   : > { %p120_p1 = scmp.lt.s32.totalorder %s372_s9, 3 }
   0x4   : > { %p121_p2 = pnand %p322_p0, %p120_p1 }
   0x5   : > { %p144_p3 = scmp.lt.s32.totalorder (!%p121_p2), %s318_s10, 1  ;;  %v374_v0 = vmov (!%p121_p2), 2   ;;  %v375_v1 = vmov (!%p121_p2), 0   ;;  %v376_v3 = vmov (!%p121_p2), 3   ;;  %v377_v4 = vmov (!%p121_p2), 1  }
   0x6   : > { %124 = sbr.rel (%p121_p2) target bundleno = 488 (0x1e8), region = 28  ;;  %347 = vset.pattern.permute.xlu1 (!%p121_p2), %v374_v0  ;;  %345 = vset.pattern.permute.xlu0 (!%p121_p2), %v375_v1  ;;  %vm195_vm0 = vcmask (!%p121_p2), 261120   ;;  %v378_v7 = vmov (!%p121_p2), 0.0   ;;  %vm190_vm2 = vcmask (!%p121_p2), 31744   ;;  %v158_v10 = vlaneseq (!%p121_p2) }
   0x7   : > { %vm251_vm8 = vcmask (!%p121_p2), 7168  }
   0x8   : > { %v159_v11 = vand.u32 (!%p121_p2), 127, %v158_v10 }
   0xd   : > { %s430_s10 = smov (!%p144_p3, %s318_s10), 1 }
   0xe   : > { %s402_s11 = sshll.u32 %s430_s10, 3 }
   0xf   : > { %s151_s14 = scalar_lea.vmem %s427_s1, %s402_s11  ;;  %s147_s17 = scalar_lea.vmem %s426_s0, %s402_s11 }
  0x10   : > { %v157_v2 = vld [vmem:[%s151_s14] sm:$0xff]  ;;  %s155_s20 = scalar_lea.vmem %s428_s2, %s402_s11 }
  0x11   : > { %175 = vperm.xlu1 %347, %v157_v2   ;;  %161 = vperm.xlu0 %345, %v157_v2   ;;  %v156_v5 = vld [vmem:[%s147_s17] sm:$0xff]  ;;  %vm188_vm1 = vcmp.eq.s32.totalorder %v157_v2, 32 }
  0x12   : > { %v196_v6 = vsel %vm195_vm0, %v156_v5, -inf  ;;  %v189_v8 = vsel %vm188_vm1, 1.0, %v378_v7  ;;  %v224_v22 = vsub.f32 0.0, %v156_v5 }
  0x13   : > { %v191_v9 = vsel %vm190_vm2, %v189_v8, 0.0 }
  0x15   : > { %348 = vset.pattern.permute.xlu1 %v376_v3  ;;  %346 = vset.pattern.permute.xlu0 %v377_v4 }
  0x16   : > { %182 = vperm.xlu1 %348, %v157_v2   ;;  %168 = vperm.xlu0 %346, %v157_v2  }
  0x1a   : > { %349 = vset.pattern.permute.xlu0 %v376_v3 }
  0x3a   : > { %197 = vmax.xlane.f32.xlu1 %v196_v6 }
  0x3e   : > { %192 = vadd.xlane.f32.xlu1 %v191_v9 }
  0x90   : > { %v162_v12 = vpop.permute.xlu0 %161  ;;  %v176_v13 = vpop.permute.xlu1 %175 }
  0x91   : > { %vm163_vm3 = vcmp.eq.s32.totalorder %v159_v11, %v162_v12  ;;  %vm177_vm4 = vcmp.eq.s32.totalorder %v159_v11, %v176_v13 }
  0x92   : > { %v326_v16 = vsel %vm163_vm3, 1.0, %v378_v7  ;;  %v328_v19 = vsel %vm177_vm4, 1.0, %v378_v7 }
  0x95   : > { %v169_v14 = vpop.permute.xlu0 %168  ;;  %v183_v15 = vpop.permute.xlu1 %182 }
  0x96   : > { %vm170_vm5 = vcmp.eq.s32.totalorder %v159_v11, %v169_v14  ;;  %vm184_vm6 = vcmp.eq.s32.totalorder %v159_v11, %v183_v15 }
  0x97   : > { %v327_v17 = vsel %vm170_vm5, 1.0, %v378_v7  ;;  %v329_v20 = vsel %vm184_vm6, 1.0, %v378_v7 }
  0x98   : > { %v173_v18 = vadd.f32 %v327_v17, %v326_v16 }
  0x9a   : > { %v180_v21 = vadd.f32 %v328_v19, %v173_v18 }
  0x9c   : > { %v187_v23 = vadd.f32 %v329_v20, %v180_v21 }
  0x9e   : > { %vm194_vm7 = vcmp.gt.f32.partialorder %v187_v23, 0.0 }
  0x9f   : > { %v225_v24 = vsel %vm194_vm7, %v224_v22, -1e+30 }
  0xa0   : > { %v226_v25 = vsel %vm195_vm0, %v225_v24, -inf }
  0xa1   : > { %227 = vmax.xlane.f32.xlu0 %v226_v25 }
  0xc7   : > { %v198_v26 = vpop.xlane.xlu1 %197 }
  0xc8   : > { %v199_v27 = vmax.f32 %v198_v26, 0.0 }
  0xca   : > { %v200_v28 = vsub.f32 %v156_v5, %v199_v27  ;;  %v203_v42 = vsub.f32 0.0, %v199_v27 }
  0xcb   : > { %v193_v49 = vpop.xlane.xlu1 %192 }
  0xcc   : > { %v201_v29 = vmul.f32 1.442695, %v200_v28  ;;  %v204_v43 = vmul.f32 1.442695, %v203_v42  ;;  %v238_v56 = vadd.f32 1.0, %v193_v49 }
  0xce   : > { %350 = vpow2.f32 %v201_v29 }
  0xd8   : > { %v351_v30 = vpop.eup %350 }
  0xd9   : > { %v206_v31 = vsel %vm195_vm0, %v351_v30, 0.0  ;;  %v213_v32 = vmul.f32 %v351_v30, %v187_v23 }
  0xda   : > { %207 = vadd.xlane.f32.xlu0 %v206_v31 }
  0xdb   : > { %v214_v33 = vsel %vm195_vm0, %v213_v32, 0.0 }
  0xde   : > { %215 = vadd.xlane.f32.xlu0 %v214_v33 }
 0x12e   : > { %v228_v34 = vpop.xlane.xlu0 %227 }
 0x12f   : > { %v229_v35 = vmax.f32 %v228_v34, 0.0 }
 0x131   : > { %v230_v36 = vsub.f32 %v224_v22, %v229_v35  ;;  %v239_v47 = vsub.f32 0.0, %v229_v35 }
 0x133   : > { %v231_v37 = vsel %vm194_vm7, %v230_v36, -1e+30  ;;  %v240_v48 = vmul.f32 1.442695, %v239_v47 }
 0x134   : > { %v232_v38 = vmul.f32 1.442695, %v231_v37 }
 0x136   : > { %352 = vpow2.f32 %v232_v38 }
 0x137   : > { %354 = vpow2.f32 %v204_v43 }
 0x140   : > { %v353_v39 = vpop.eup %352 }
 0x141   : > { %v234_v40 = vmul.f32 %v353_v39, %v187_v23  ;;  %v355_v45 = vpop.eup %354 }
 0x142   : > { %v217_v51 = vmul.f32 %v355_v45, %v193_v49 }
 0x143   : > { %v235_v41 = vsel %vm195_vm0, %v234_v40, 0.0 }
 0x144   : > { %236 = vadd.xlane.f32.xlu1 %v235_v41 }
 0x167   : > { %v208_v44 = vpop.xlane.xlu0 %207 }
 0x168   : > { %v209_v46 = vadd.f32 %v355_v45, %v208_v44 }
 0x16a   : > { %356 = vrcp.f32 %v209_v46 }
 0x16b   : > { %v216_v50 = vpop.xlane.xlu0 %215  ;;  %358 = vpow2.f32 %v240_v48 }
 0x16c   : > { %v218_v53 = vadd.f32 %v217_v51, %v216_v50  ;;  %360 = vlog2.f32 %v209_v46 }
 0x174   : > { %v357_v52 = vpop.eup %356 }
 0x175   : > { %v220_v54 = vmul.f32 %v357_v52, %v218_v53  ;;  %v359_v57 = vpop.eup %358 }
 0x176   : > { %v242_v59 = vmul.f32 %v359_v57, %v238_v56  ;;  %v361_v63 = vpop.eup %360 }
 0x177   : > { %v221_v55 = vsub.f32 1.0, %v220_v54  ;;  %v211_v0 = vmul.f32 0.6931472, %v361_v63 }
 0x179   : > { %v222_v58 = vmax.f32 %v221_v55, 1e-07  ;;  %v212_v4 = vadd.f32 %v211_v0, %v199_v27 }
 0x17b   : > { %v223_v61 = vmin.f32 %v222_v58, 1.0 }
 0x1d1   : > { %v237_v60 = vpop.xlane.xlu1 %236 }
 0x1d2   : > { %v243_v62 = vadd.f32 %v242_v59, %v237_v60 }
 0x1d4   : > { %362 = vlog2.f32 %v243_v62 }
 0x1d5   : > { %364 = vlog2.f32 %v223_v61 }
 0x1de   : > { %v363_v1 = vpop.eup %362 }
 0x1df   : > { %v245_v2 = vmul.f32 0.6931472, %v363_v1  ;;  %v365_v3 = vpop.eup %364 }
 0x1e0   : > { %v249_v6 = vmul.f32 0.6931472, %v365_v3 }
 0x1e1   : > { %v246_v5 = vadd.f32 %v245_v2, %v229_v35 }
 0x1e3   : > { %v247_v7 = vadd.f32 %v246_v5, %v212_v4 }
 0x1e5   : > { %v250_v8 = vadd.f32 %v249_v6, %v247_v7 }
 0x1e7   : > { %252 = vst.msk [vmem:[%s155_s20] sm:$0xff] %vm251_vm8, %v250_v8 }
 0x1e8 PF: > { %s12_s9 = sadd.s32 1, %s372_s9  }
 0x1e9   : > { %p9_p4 = scmp.ge.s32.totalorder %s12_s9, 4  }
 0x1eb   :  { %11 = sbr.rel (!%p9_p4) target bundleno = 1 (0x1), region = 61 }

</bundles_post_ra>
